<compile_context>
chip_gen: v7x
topology: tpu7x:2x2x1
jax: 0.10.0
libtpu: 0.0.40
codegen_flags: <defaults>
</compile_context>

<pallas_src>
import jax
import jax.numpy as jnp
from jax.experimental import pallas as pl
from jax.experimental.pallas import tpu as pltpu


def classblock_kernel(x_ref, w1_ref, b1_ref, w2_ref, b2_ref, o_ref):
    # Two MXU matmuls (bf16 operands, f32 accumulation) + one fused VPU pass.
    x = x_ref[...].astype(jnp.bfloat16)                               # (TB, D)
    h = jnp.dot(x, w1_ref[...], preferred_element_type=jnp.float32)   # (TB, H) f32
    h = h + b1_ref[...]                                               # folded BN + bias
    h = jnp.where(h >= 0.0, h, 0.5 * h)                               # LeakyReLU(0.5)
    # Dropout(p=0.3): identity in eval mode
    out = jnp.dot(h.astype(jnp.bfloat16), w2_ref[...],
                  preferred_element_type=jnp.float32)                 # (TB, Cpad) f32
    o_ref[...] = out + b2_ref[...]


def _round_up(n, m):
    return ((n + m - 1) // m) * m


def _choose_batch_tile(b):
    # Big tiles amortize the ~0.35 us per-grid-step overhead (measured ~85% of
    # HBM roofline at 512/1024-row tiles vs ~63% at 256).  Keep multiples of 8
    # and, for mid-size batches, aim for >=2 grid steps so both v7x
    # TensorCores get work.
    if b >= 2048:
        return 1024
    if b >= 1024:
        return 512
    if b <= 8:
        return 8
    return min(_round_up(pl.cdiv(b, 2), 8), 512)


def _vmem_budget_bytes(tb, d, h, cpad):
    x_bytes = tb * d * 4 * 2            # f32 x tile, double-buffered
    o_bytes = tb * cpad * 4 * 2         # f32 out tile, double-buffered
    w_bytes = d * h * 2 + h * 4 + h * cpad * 2 + cpad * 4  # single-buffered weights
    budget = int((x_bytes + o_bytes + w_bytes) * 1.5) + (4 << 20)
    budget = max(budget, 8 << 20)
    return min(budget, 48 << 20)        # headroom under v7x's 64 MiB physical VMEM


def prepare_classblock_params(params, eps=1e-5):
    """One-time preprocessing: fold eval-mode BatchNorm1d into (w1, bias) and
    pad the classifier to a lane-dense multiple of 128.  Call once and reuse
    for every forward."""
    w1 = params["w1"]            # (D, H)
    b1 = params["b1"]            # (1, H)
    gamma = params["bn_gamma"]   # (1, H)
    beta = params["bn_beta"]     # (1, H)
    run_mean = params["bn_mean"]
    run_var = params["bn_var"]
    w2 = params["w2"]            # (H, C)
    b2 = params["b2"]            # (1, C)

    scale = gamma / jnp.sqrt(run_var + eps)                 # (1, H)
    shift = beta - run_mean * scale                         # (1, H)
    w1_fold = (w1 * scale).astype(jnp.bfloat16)             # (D, H) bf16 for MXU
    b1_fold = (b1 * scale + shift).astype(jnp.float32)      # (1, H) f32

    H, C = w2.shape
    Cpad = max(128, _round_up(C, 128))
    w2_pad = jnp.zeros((H, Cpad), jnp.bfloat16).at[:, :C].set(w2.astype(jnp.bfloat16))
    b2_pad = jnp.zeros((1, Cpad), jnp.float32).at[:, :C].set(b2.astype(jnp.float32))

    return {
        "w1_fold": w1_fold, "b1_fold": b1_fold,
        "w2_pad": w2_pad, "b2_pad": b2_pad,
        "class_num": C,
    }


def class_block_forward(x, prepared):
    """x: (B, input_dim) float32.  prepared: output of prepare_classblock_params."""
    w1_fold = prepared["w1_fold"]
    b1_fold = prepared["b1_fold"]
    w2_pad = prepared["w2_pad"]
    b2_pad = prepared["b2_pad"]
    C = prepared["class_num"]

    B, D = x.shape
    H = w1_fold.shape[1]
    Cpad = w2_pad.shape[1]

    TB = _choose_batch_tile(B)
    n_tiles = pl.cdiv(B, TB)          # ragged last block handled by Pallas
    grid = (n_tiles,)

    cost = pl.CostEstimate(
        flops=2 * n_tiles * TB * (D * H + H * Cpad),
        transcendentals=0,
        bytes_accessed=(B * D * 4 + D * H * 2 + H * Cpad * 2
                        + H * 4 + Cpad * 4 + B * Cpad * 4),
    )

    out_pad = pl.pallas_call(
        classblock_kernel,
        out_shape=jax.ShapeDtypeStruct((B, Cpad), jnp.float32),
        grid=grid,
        in_specs=[
            # x tile: pipelined (double-buffered) over the batch axis.
            pl.BlockSpec((TB, D), lambda i: (i, 0)),
            # Constant-index weights/biases: single-buffered (VMEM-resident).
            pl.BlockSpec((D, H), lambda i: (0, 0), pipeline_mode=pl.Buffered(1)),
            pl.BlockSpec((1, H), lambda i: (0, 0), pipeline_mode=pl.Buffered(1)),
            pl.BlockSpec((H, Cpad), lambda i: (0, 0), pipeline_mode=pl.Buffered(1)),
            pl.BlockSpec((1, Cpad), lambda i: (0, 0), pipeline_mode=pl.Buffered(1)),
        ],
        out_specs=pl.BlockSpec((TB, Cpad), lambda i: (i, 0)),
        compiler_params=pltpu.CompilerParams(
            dimension_semantics=("parallel",),
            vmem_limit_bytes=_vmem_budget_bytes(TB, D, H, Cpad),
        ),
        cost_estimate=cost,
    )(x, w1_fold, b1_fold, w2_pad, b2_pad)

    # Only the class-dim slice remains (tiny); no batch padding was added.
    return out_pad[:, :C]


def init_classblock_params(key, input_dim, class_num, num_bottleneck=512):
    """Deterministic parameter init mirroring the PyTorch module's init."""
    k1, k2, k3 = jax.random.split(key, 3)

    # add_block_1 Linear: kaiming_normal_(mode='fan_out', a=0) -> std = sqrt(2/out)
    std1 = (2.0 / num_bottleneck) ** 0.5
    w1 = std1 * jax.random.normal(k1, (input_dim, num_bottleneck), jnp.float32)
    b1 = jnp.zeros((1, num_bottleneck), jnp.float32)

    # BatchNorm1d: weight ~ N(1, 0.02), bias = 0, running stats at defaults
    bn_gamma = 1.0 + 0.02 * jax.random.normal(k2, (1, num_bottleneck), jnp.float32)
    bn_beta = jnp.zeros((1, num_bottleneck), jnp.float32)
    bn_mean = jnp.zeros((1, num_bottleneck), jnp.float32)
    bn_var = jnp.ones((1, num_bottleneck), jnp.float32)

    # classifier_1 Linear: weight ~ N(0, 0.001), bias = 0
    w2 = 0.001 * jax.random.normal(k3, (num_bottleneck, class_num), jnp.float32)
    b2 = jnp.zeros((1, class_num), jnp.float32)

    return {
        "w1": w1, "b1": b1,
        "bn_gamma": bn_gamma, "bn_beta": bn_beta,
        "bn_mean": bn_mean, "bn_var": bn_var,
        "w2": w2, "b2": b2,
    }


def reference_forward_f32(x, params):
    """Full-precision pure-JAX reference (module eval() semantics)."""
    eps = 1e-5
    h = x @ params["w1"] + params["b1"]
    scale = params["bn_gamma"] / jnp.sqrt(params["bn_var"] + eps)
    shift = params["bn_beta"] - params["bn_mean"] * scale
    h = h * scale + shift
    h = jnp.where(h >= 0.0, h, 0.5 * h)
    return h @ params["w2"] + params["b2"]


def reference_forward_bf16(x, params):
    """Pure-JAX reference mirroring the kernel's bf16 matmul / f32 math."""
    eps = 1e-5
    scale = params["bn_gamma"] / jnp.sqrt(params["bn_var"] + eps)
    shift = params["bn_beta"] - params["bn_mean"] * scale
    w1f = (params["w1"] * scale).astype(jnp.bfloat16)
    b1f = params["b1"] * scale + shift
    h = jnp.dot(x.astype(jnp.bfloat16), w1f,
                preferred_element_type=jnp.float32) + b1f
    h = jnp.where(h >= 0.0, h, 0.5 * h)
    return jnp.dot(h.astype(jnp.bfloat16), params["w2"].astype(jnp.bfloat16),
                   preferred_element_type=jnp.float32) + params["b2"]


if __name__ == "__main__":
    key = jax.random.PRNGKey(0)
    kx, kx2, kp = jax.random.split(key, 3)

    input_dim, class_num, num_bottleneck = 32, 16, 512
    params = init_classblock_params(kp, input_dim, class_num, num_bottleneck)
    prepared = prepare_classblock_params(params)   # one-time fold/pad

    # --- aligned batch ---
    B = 8
    x = jax.random.normal(kx, (B, input_dim), jnp.float32)
    out = jax.block_until_ready(class_block_forward(x, prepared))
    assert out.shape == (B, class_num)

    ref_bf16 = reference_forward_bf16(x, params)
    assert jnp.allclose(out, ref_bf16, atol=2e-4, rtol=1e-3), "mismatch vs bf16 reference"
    ref_f32 = reference_forward_f32(x, params)
    assert jnp.allclose(out, ref_f32, atol=5e-3, rtol=5e-2), "mismatch vs f32 reference"

    # --- ragged batch (exercises the no-padding partial-last-block path) ---
    B2 = 10
    x2 = jax.random.normal(kx2, (B2, input_dim), jnp.float32)
    out2 = jax.block_until_ready(class_block_forward(x2, prepared))
    assert out2.shape == (B2, class_num)
    ref2 = reference_forward_bf16(x2, params)
    assert jnp.allclose(out2, ref2, atol=2e-4, rtol=1e-3), "ragged-batch mismatch"

    print("KERNEL_OK")
</pallas_src>

<mosaic_0001>
module attributes {stable_mosaic.version = 11 : i64} {
  func.func @classblock_kernel(%arg0: i32, %arg1: memref<8x32xf32, #tpu.memory_space<vmem>>, %arg2: memref<32x512xbf16, #tpu.memory_space<vmem>>, %arg3: memref<1x512xf32, #tpu.memory_space<vmem>>, %arg4: memref<512x128xbf16, #tpu.memory_space<vmem>>, %arg5: memref<1x128xf32, #tpu.memory_space<vmem>>, %arg6: memref<8x128xf32, #tpu.memory_space<vmem>>) attributes {dimension_semantics = [#tpu.dimension_semantics<parallel>], iteration_bounds = array<i64: 1>, scalar_prefetch = 0 : i64, scratch_operands = 0 : i64, tpu.core_type = #tpu.core_type<tc>, window_params = [{transform_indices = @transform_0, window_bounds = array<i64: 8, 32>}, {pipeline_mode = #tpu.pipeline_mode<synchronous>, transform_indices = @transform_1, window_bounds = array<i64: 32, 512>}, {pipeline_mode = #tpu.pipeline_mode<synchronous>, transform_indices = @transform_2, window_bounds = array<i64: 1, 512>}, {pipeline_mode = #tpu.pipeline_mode<synchronous>, transform_indices = @transform_3, window_bounds = array<i64: 512, 128>}, {pipeline_mode = #tpu.pipeline_mode<synchronous>, transform_indices = @transform_4, window_bounds = array<i64: 1, 128>}, {transform_indices = @transform_5, window_bounds = array<i64: 8, 128>}]} {
    %c0 = arith.constant 0 : index
    %c0_0 = arith.constant 0 : index
    %0 = vector.load %arg1[%c0, %c0_0] : memref<8x32xf32, #tpu.memory_space<vmem>>, vector<8x32xf32>
    %1 = arith.truncf %0 : vector<8x32xf32> to vector<8x32xbf16>
    %c0_1 = arith.constant 0 : index
    %c0_2 = arith.constant 0 : index
    %2 = vector.load %arg2[%c0_1, %c0_2] : memref<32x512xbf16, #tpu.memory_space<vmem>>, vector<32x512xbf16>
    %cst = arith.constant dense<0.000000e+00> : vector<8x512xf32>
    %3 = tpu.matmul %1, %2, %cst {dimension_numbers = #tpu.dot_dimension_numbers<[1], [0], [0], [1], [0, 0, 1, 1], [], []>} : vector<8x32xbf16>, vector<32x512xbf16>, vector<8x512xf32> -> vector<8x512xf32>
    %c0_3 = arith.constant 0 : index
    %c0_4 = arith.constant 0 : index
    %4 = vector.load %arg3[%c0_3, %c0_4] : memref<1x512xf32, #tpu.memory_space<vmem>>, vector<1x512xf32>
    %5 = vector.broadcast %4 : vector<1x512xf32> to vector<8x512xf32>
    %6 = arith.addf %3, %5 : vector<8x512xf32>
    %cst_5 = arith.constant 0.000000e+00 : f32
    %7 = vector.broadcast %cst_5 : f32 to vector<8x512xf32>
    %8 = arith.cmpf oge, %6, %7 : vector<8x512xf32>
    %cst_6 = arith.constant 5.000000e-01 : f32
    %9 = vector.broadcast %cst_6 : f32 to vector<8x512xf32>
    %10 = arith.mulf %9, %6 : vector<8x512xf32>
    %11 = arith.select %8, %6, %10 : vector<8x512xi1>, vector<8x512xf32>
    %12 = arith.truncf %11 : vector<8x512xf32> to vector<8x512xbf16>
    %c0_7 = arith.constant 0 : index
    %c0_8 = arith.constant 0 : index
    %13 = vector.load %arg4[%c0_7, %c0_8] : memref<512x128xbf16, #tpu.memory_space<vmem>>, vector<512x128xbf16>
    %cst_9 = arith.constant dense<0.000000e+00> : vector<8x128xf32>
    %14 = tpu.matmul %12, %13, %cst_9 {dimension_numbers = #tpu.dot_dimension_numbers<[1], [0], [0], [1], [0, 0, 1, 1], [], []>} : vector<8x512xbf16>, vector<512x128xbf16>, vector<8x128xf32> -> vector<8x128xf32>
    %c0_10 = arith.constant 0 : index
    %c0_11 = arith.constant 0 : index
    %15 = vector.load %arg5[%c0_10, %c0_11] : memref<1x128xf32, #tpu.memory_space<vmem>>, vector<1x128xf32>
    %16 = vector.broadcast %15 : vector<1x128xf32> to vector<8x128xf32>
    %17 = arith.addf %14, %16 : vector<8x128xf32>
    %c0_12 = arith.constant 0 : index
    %c0_13 = arith.constant 0 : index
    %18 = vector.load %arg6[%c0_12, %c0_13] : memref<8x128xf32, #tpu.memory_space<vmem>>, vector<8x128xf32>
    tpu.vector_store %arg6[%c0_12, %c0_13], %17 {strides = array<i32>} : memref<8x128xf32, #tpu.memory_space<vmem>>, vector<8x128xf32>,
    return
  }
  func.func @transform_0(%arg0: i32) -> (i32, i32) {
    %c0_i32 = arith.constant 0 : i32
    %c0_i32_0 = arith.constant 0 : i32
    return %arg0, %c0_i32 : i32, i32
  }
  func.func @transform_1(%arg0: i32) -> (i32, i32) {
    %c0_i32 = arith.constant 0 : i32
    %c0_i32_0 = arith.constant 0 : i32
    %c0_i32_1 = arith.constant 0 : i32
    return %c0_i32, %c0_i32_0 : i32, i32
  }
  func.func @transform_2(%arg0: i32) -> (i32, i32) {
    %c0_i32 = arith.constant 0 : i32
    %c0_i32_0 = arith.constant 0 : i32
    %c0_i32_1 = arith.constant 0 : i32
    return %c0_i32, %c0_i32_0 : i32, i32
  }
  func.func @transform_3(%arg0: i32) -> (i32, i32) {
    %c0_i32 = arith.constant 0 : i32
    %c0_i32_0 = arith.constant 0 : i32
    %c0_i32_1 = arith.constant 0 : i32
    return %c0_i32, %c0_i32_0 : i32, i32
  }
  func.func @transform_4(%arg0: i32) -> (i32, i32) {
    %c0_i32 = arith.constant 0 : i32
    %c0_i32_0 = arith.constant 0 : i32
    %c0_i32_1 = arith.constant 0 : i32
    return %c0_i32, %c0_i32_0 : i32, i32
  }
  func.func @transform_5(%arg0: i32) -> (i32, i32) {
    %c0_i32 = arith.constant 0 : i32
    %c0_i32_0 = arith.constant 0 : i32
    return %arg0, %c0_i32 : i32, i32
  }
}

</mosaic_0001>

<bundles_post_ra>
// kernel: tpu_custom_call.1
= control target key start
LH: loop header
LB: loop body
LE: loop exit
PB: predicated region body
PF: predicated region fallthrough
CT: control target
= control target key end

     0   :  { %10 = vsyncpa [#allocation3], 0  ;;  %s922_s0 = inlined_call_operand.hbm [shape: f32[8,32], index: 0, kind: input, shape index: {}]   ;;  %s923_s1 = inlined_call_operand.hbm [shape: bf16[32,512], index: 1, kind: input, shape index: {}]   ;;  %s924_s2 = inlined_call_operand.vmem [shape: f32[1,512], index: 2, kind: input, shape index: {}]   ;;  %s925_s3 = inlined_call_operand.hbm [shape: bf16[512,128], index: 3, kind: input, shape index: {}]   ;;  %s926_s4 = inlined_call_operand.vmem [shape: f32[1,128], index: 4, kind: input, shape index: {}]   ;;  %s927_s5 = inlined_call_operand.hbm [shape: f32[8,128], index: 5, kind: output, shape index: {}]  }
   0x1   :  { %11 = vsyncpa [#allocation6], 0 }
   0x2   :  { %12 = vsyncpa [#allocation4], 0  ;;  %s829_s18 = smov [#allocation5]   ;;  %s735_s22 = scalar_lea.hbm %s923_s1, 1024 }
   0x3   :  { %s28_s19 = sshll.u32 %s829_s18, 4  ;;  %p736_p0 = scmp.ne.s32.totalorder %s923_s1, %s735_s22  ;;  %s29_s19 = int_to_ptr.vmem [resolvable:$true] %s28_s19 }
   0x4   :  { %p739_p1 = scmp.lt.u32.totalorder %s735_s22, %s923_s1 }
   0x6   :  { %p741_p2 = pnand %p739_p1, %p736_p0 }
   0x8   :  { %744 = shalt.err (!%p741_p2)
}
   0x9   :  { %s745_s27 = scalar_lea.vmem %s29_s19, 1024  ;;  %p750_p4 = scmp.lt.s32.totalorder %s29_s19, %s29_s19 }
   0xa   :  { %p746_p3 = scmp.ne.s32.totalorder %s29_s19, %s745_s27  ;;  %p751_p5 = scmp.lt.s32.totalorder %s745_s27, %s745_s27 }
   0xc   :  { %p752_p6 = por %p751_p5, %p750_p4 }
   0xe   :  { %p753_p7 = pnand %p752_p6, %p746_p3 }
  0x10   :  { %756 = shalt.err (!%p753_p7)
}
  0x11   :  { %s830_s28 = smov 256   ;;  %s831_s29 = smov 16  }
  0x12   :  { %34 = dma.hbm_to_vmem [thread:$0]  %s923_s1, 1024, %s29_s19, [#allocation6], %s830_s28, %s830_s28, %s831_s29  }
  0x13   :  { %s832_s7 = smov [#allocation2]   ;;  %s833_s9 = smov [#allocation7]  }
  0x14   :  { %s19_s8 = sshll.u32 %s832_s7, 4  ;;  %s42_s10 = sshll.u32 %s833_s9, 4  ;;  %s20_s8 = int_to_ptr.vmem [resolvable:$true] %s19_s8  ;;  %s43_s10 = int_to_ptr.vmem [resolvable:$true] %s42_s10 }
  0x15   :  { %s757_s13 = scalar_lea.hbm %s922_s0, 128 }
  0x16   :  { %p758_p8 = scmp.ne.s32.totalorder %s922_s0, %s757_s13  ;;  %p761_p9 = scmp.lt.u32.totalorder %s757_s13, %s922_s0 }
  0x18   :  { %p763_p10 = pnand %p761_p9, %p758_p8 }
  0x1a   :  { %766 = shalt.err (!%p763_p10)
}
  0x1b   :  { %s767_s1 = scalar_lea.vmem %s20_s8, 128  ;;  %p772_p12 = scmp.lt.s32.totalorder %s20_s8, %s20_s8 }
  0x1c   :  { %p768_p11 = scmp.ne.s32.totalorder %s20_s8, %s767_s1  ;;  %p773_p13 = scmp.lt.s32.totalorder %s767_s1, %s767_s1 }
  0x1e   :  { %p774_p0 = por %p773_p13, %p772_p12 }
  0x20   :  { %p775_p1 = pnand %p774_p0, %p768_p11 }
  0x22   :  { %778 = shalt.err (!%p775_p1)
}
  0x23   :  { %22 = dma.hbm_to_vmem [thread:$0]  %s922_s0, 128, %s20_s8, [#allocation3]  }
  0x24   :  { %s779_s22 = scalar_lea.hbm %s925_s3, 4096 }
  0x25   :  { %p780_p2 = scmp.ne.s32.totalorder %s925_s3, %s779_s22  ;;  %p783_p3 = scmp.lt.u32.totalorder %s779_s22, %s925_s3 }
  0x27   :  { %p785_p4 = pnand %p783_p3, %p780_p2 }
  0x29   :  { %788 = shalt.err (!%p785_p4)
}
  0x2a   :  { %s789_s27 = scalar_lea.vmem %s43_s10, 4096  ;;  %p794_p6 = scmp.lt.s32.totalorder %s43_s10, %s43_s10 }
  0x2b   :  { %p790_p5 = scmp.ne.s32.totalorder %s43_s10, %s789_s27  ;;  %p795_p7 = scmp.lt.s32.totalorder %s789_s27, %s789_s27 }
  0x2d   :  { %p796_p8 = por %p795_p7, %p794_p6 }
  0x2f   :  { %p797_p9 = pnand %p796_p8, %p790_p5 }
  0x31   :  { %800 = shalt.err (!%p797_p9)
}
  0x32   :  { %s834_s0 = smov 64   ;;  %s835_s28 = smov 4  }
  0x33   :  { %48 = dma.hbm_to_vmem [thread:$0]  %s925_s3, 4096, %s43_s10, [#allocation6], %s834_s0, %s834_s0, %s835_s28  }
  0x34   :  { %823 = dma.done.wait [#allocation3], 128  }
  0x35   :  { %824 = vsyncadd [#allocation3], 4294967168 }
  0x36   :  { %825 = dma.done.wait [#allocation6], 5120  }
  0x37   :  { %826 = vsyncadd [#allocation6], 4294962176  ;;  %v836_v0 = vmov 0   ;;  %v691_v1 = vld [vmem:[#allocation5 + $0x4] ss:$16 sps:$4 sm:$0xff]   ;;  %v61_v9 = vld [vmem:[#allocation2] sm:$0xff]  ;;  %v73_v43 = vlaneseq }
  0x38   :  { %169 = vmatprep.mubr.bf16.mxu0 %v836_v0  ;;  %210 = vmatprep.mubr.bf16.mxu1 %v836_v0  ;;  %v693_v2 = vld [vmem:[#allocation5 + $0xc] ss:$16 sps:$4 sm:$0xff]   ;;  %v695_v3 = vld [vmem:[#allocation5] ss:$16 sps:$4 sm:$0xff]   ;;  %v696_v4 = vld [vmem:[#allocation5 + $0x8] ss:$16 sps:$4 sm:$0xff]   ;;  %v62_v11 = vpack.c.bf16 %v61_v9, %v61_v9 }
  0x39   :  { %137 = vmatprep.subr.bf16.mxu0 %v691_v1  ;;  %178 = vmatprep.subr.bf16.mxu1 %v693_v2  ;;  %v697_v5 = vld [vmem:[#allocation5 + $0x24] ss:$16 sps:$4 sm:$0xff]   ;;  %v699_v6 = vld [vmem:[#allocation5 + $0x2c] ss:$16 sps:$4 sm:$0xff]   ;;  %v701_v7 = vld [vmem:[#allocation5 + $0x20] ss:$16 sps:$4 sm:$0xff]  }
  0x3a   :  { %138 = vmatpush1.bf16.msra.mxu0 %v695_v3  ;;  %179 = vmatpush1.bf16.msra.mxu1 %v696_v4  ;;  %v702_v8 = vld [vmem:[#allocation5 + $0x28] ss:$16 sps:$4 sm:$0xff]   ;;  %v703_v10 = vld [vmem:[#allocation7 + $0x40] sm:$0xff]   ;;  %vm133_vm0 = vcmask 261120   ;;  %v711_v19 = vld [vmem:[#allocation7 + $0x50] sm:$0xff]   ;;  %v74_v44 = vshrl.u32 %v73_v43, 7 }
  0x3b   :  { %139 = vmatprep.subr.bf16.mxu0 %v697_v5  ;;  %180 = vmatprep.subr.bf16.mxu1 %v699_v6  ;;  %v704_v12 = vld [vmem:[#allocation7 + $0xc0] sm:$0xff]   ;;  %v707_v15 = vld [vmem:[#allocation7 + $0x48] sm:$0xff]   ;;  %v712_v20 = vld [vmem:[#allocation7 + $0xd0] sm:$0xff]   ;;  %s837_s8 = smov [#allocation8]  }
  0x3c   :  { %v705_v13 = vld [vmem:[#allocation7] sm:$0xff]   ;;  %v708_v16 = vld [vmem:[#allocation7 + $0xc8] sm:$0xff]   ;;  %v713_v21 = vld [vmem:[#allocation7 + $0x10] sm:$0xff]   ;;  %v75_v45 = vsub.s32 0, %v74_v44  ;;  %v83_v46 = vsub.s32 2, %v74_v44  ;;  %v79_v48 = vsub.s32 1, %v74_v44 }
  0x3d   :  { %v706_v14 = vld [vmem:[#allocation7 + $0x80] sm:$0xff]   ;;  %v709_v17 = vld [vmem:[#allocation7 + $0x8] sm:$0xff]   ;;  %v714_v22 = vld [vmem:[#allocation7 + $0x90] sm:$0xff]   ;;  %v87_v49 = vsub.s32 3, %v74_v44  ;;  %s585_s9 = sshll.u32 %s837_s8, 4  ;;  %s586_s9 = int_to_ptr.vmem [resolvable:$true] %s585_s9 }
  0x3e   :  { %140 = vmatpush1.bf16.msra.mxu0 %v701_v7  ;;  %181 = vmatpush1.bf16.msra.mxu1 %v702_v8  ;;  %v710_v18 = vld [vmem:[#allocation7 + $0x88] sm:$0xff]   ;;  %v715_v23 = vld [vmem:[#allocation7 + $0x58] sm:$0xff]   ;;  %v719_v27 = vld [vmem:[#allocation7 + $0x60] sm:$0xff]   ;;  %s801_s10 = scalar_lea.vmem %s586_s9, 128  ;;  %p806_p11 = scmp.lt.s32.totalorder %s586_s9, %s586_s9 }
  0x3f   :  { %638 = vmatprep.subr.bf16.mxu0 %v703_v10  ;;  %660 = vmatprep.subr.bf16.mxu1 %v704_v12  ;;  %v716_v24 = vld [vmem:[#allocation7 + $0xd8] sm:$0xff]   ;;  %v720_v28 = vld [vmem:[#allocation7 + $0xe0] sm:$0xff]   ;;  %v723_v31 = vld [vmem:[#allocation7 + $0x68] sm:$0xff]   ;;  %p802_p10 = scmp.ne.s32.totalorder %s586_s9, %s801_s10  ;;  %p807_p12 = scmp.lt.s32.totalorder %s801_s10, %s801_s10 }
  0x40   :  { %v717_v25 = vld [vmem:[#allocation7 + $0x18] sm:$0xff]   ;;  %v721_v29 = vld [vmem:[#allocation7 + $0x20] sm:$0xff]   ;;  %v724_v32 = vld [vmem:[#allocation7 + $0xe8] sm:$0xff]  }
  0x41   :  { %603 = vmatmul.mubr.msk.bf16.vlgmr.msra.gmra.mrb[0].mxu0 %vm133_vm0, %v62_v11  ;;  %604 = vmatmul.mubr.msk.bf16.vlgmr.msra.gmra.mrb[0].mxu1 %vm133_vm0, %v62_v11  ;;  %v718_v26 = vld [vmem:[#allocation7 + $0x98] sm:$0xff]   ;;  %v722_v30 = vld [vmem:[#allocation7 + $0xa0] sm:$0xff]   ;;  %v725_v33 = vld [vmem:[#allocation7 + $0x28] sm:$0xff]   ;;  %p808_p13 = por %p807_p12, %p806_p11 }
  0x42   :  { %639 = vmatpush3.bf16.msra.mxu0 %v705_v13  ;;  %661 = vmatpush3.bf16.msra.mxu1 %v706_v14  ;;  %v726_v34 = vld [vmem:[#allocation7 + $0xa8] sm:$0xff]   ;;  %v727_v35 = vld [vmem:[#allocation7 + $0x70] sm:$0xff]   ;;  %v731_v39 = vld [vmem:[#allocation7 + $0x78] sm:$0xff]  }
  0x43   :  { %640 = vmatprep.subr.bf16.mxu0 %v707_v15  ;;  %662 = vmatprep.subr.bf16.mxu1 %v708_v16  ;;  %v728_v36 = vld [vmem:[#allocation7 + $0xf0] sm:$0xff]   ;;  %v732_v40 = vld [vmem:[#allocation7 + $0xf8] sm:$0xff]   ;;  %p809_p0 = pnand %p808_p13, %p802_p10 }
  0x44   :  { %v729_v37 = vld [vmem:[#allocation7 + $0x30] sm:$0xff]   ;;  %v733_v41 = vld [vmem:[#allocation7 + $0x38] sm:$0xff]  }
  0x45   :  { %v730_v38 = vld [vmem:[#allocation7 + $0xb0] sm:$0xff]   ;;  %v734_v42 = vld [vmem:[#allocation7 + $0xb8] sm:$0xff]  }
  0x46   :  { %641 = vmatpush3.bf16.msra.mxu0 %v709_v17  ;;  %663 = vmatpush3.bf16.msra.mxu1 %v710_v18  ;;  %v71_v47 = vld [vmem:[%s924_s2] sm:$0xf] }
  0x47   :  { %642 = vmatprep.subr.bf16.mxu0 %v711_v19  ;;  %664 = vmatprep.subr.bf16.mxu1 %v712_v20  ;;  %v76_v50 = vrot.slane %v71_v47, %v75_v45  ;;  %v84_v51 = vrot.slane %v71_v47, %v83_v46  ;;  %v80_v52 = vrot.slane %v71_v47, %v79_v48  ;;  %v605_v16 = vld [vmem:[%s926_s4] ss:$0 sm:$0xff] }
  0x48   :  { %v88_v53 = vrot.slane %v71_v47, %v87_v49 }
  0x4a   :  { %643 = vmatpush3.bf16.msra.mxu0 %v713_v21  ;;  %665 = vmatpush3.bf16.msra.mxu1 %v714_v22 }
  0x4b   :  { %644 = vmatprep.subr.bf16.mxu0 %v715_v23  ;;  %666 = vmatprep.subr.bf16.mxu1 %v716_v24 }
  0x4e   :  { %645 = vmatpush3.bf16.msra.mxu0 %v717_v25  ;;  %667 = vmatpush3.bf16.msra.mxu1 %v718_v26 }
  0x4f   :  { %646 = vmatprep.subr.bf16.mxu0 %v719_v27  ;;  %668 = vmatprep.subr.bf16.mxu1 %v720_v28 }
  0x52   :  { %647 = vmatpush3.bf16.msra.mxu0 %v721_v29  ;;  %669 = vmatpush3.bf16.msra.mxu1 %v722_v30 }
  0x53   :  { %648 = vmatprep.subr.bf16.mxu0 %v723_v31  ;;  %670 = vmatprep.subr.bf16.mxu1 %v724_v32 }
  0x56   :  { %649 = vmatpush3.bf16.msra.mxu0 %v725_v33  ;;  %671 = vmatpush3.bf16.msra.mxu1 %v726_v34 }
  0x57   :  { %650 = vmatprep.subr.bf16.mxu0 %v727_v35  ;;  %672 = vmatprep.subr.bf16.mxu1 %v728_v36 }
  0x5a   :  { %651 = vmatpush3.bf16.msra.mxu0 %v729_v37  ;;  %673 = vmatpush3.bf16.msra.mxu1 %v730_v38 }
  0x5b   :  { %652 = vmatprep.subr.bf16.mxu0 %v731_v39  ;;  %674 = vmatprep.subr.bf16.mxu1 %v732_v40 }
  0x5e   :  { %653 = vmatpush3.bf16.msra.mxu0 %v733_v41  ;;  %675 = vmatpush3.bf16.msra.mxu1 %v734_v42 }
 0x114   :  { %v171_v54 = vpop.f32.mrb[0].mxu0  ;;  %v212_v55 = vpop.f32.mrb[0].mxu1 }
 0x115   :  { %v172_v56 = vadd.f32 %v171_v54, %v76_v50  ;;  %v213_v57 = vadd.f32 %v212_v55, %v84_v51  ;;  %v173_v58 = vpop.f32.mrb[1].mxu0  ;;  %v214_v59 = vpop.f32.mrb[1].mxu1 }
 0x116   :  { %v174_v60 = vadd.f32 %v173_v58, %v80_v52  ;;  %v215_v61 = vadd.f32 %v214_v59, %v88_v53  ;;  %v175_v62 = vpop.f32.mrb[2].mxu0  ;;  %v216_v63 = vpop.f32.mrb[2].mxu1 }
 0x117   :  { %vm219_vm1 = vcmp.ge.f32.partialorder %v172_v56, 0.0  ;;  %v223_v0 = vmul.f32 0.5, %v172_v56  ;;  %vm221_vm2 = vcmp.ge.f32.partialorder %v213_v57, 0.0  ;;  %v225_v1 = vmul.f32 0.5, %v213_v57  ;;  %v176_v2 = vpop.f32.mrb[3].mxu0  ;;  %v217_v3 = vpop.f32.mrb[3].mxu1 }
 0x118   :  { %vm220_vm3 = vcmp.ge.f32.partialorder %v174_v60, 0.0  ;;  %v224_v4 = vmul.f32 0.5, %v174_v60  ;;  %vm222_vm4 = vcmp.ge.f32.partialorder %v215_v61, 0.0  ;;  %v226_v5 = vmul.f32 0.5, %v215_v61 }
 0x119   :  { %v227_v6 = vsel %vm219_vm1, %v172_v56, %v223_v0  ;;  %v229_v7 = vsel %vm221_vm2, %v213_v57, %v225_v1 }
 0x11a   :  { %v228_v8 = vsel %vm220_vm3, %v174_v60, %v224_v4  ;;  %v230_v9 = vsel %vm222_vm4, %v215_v61, %v226_v5  ;;  %v231_v12 = vpack.c.bf16 %v227_v6, %v227_v6  ;;  %v233_v13 = vpack.c.bf16 %v229_v7, %v229_v7 }
 0x11b   :  { %v232_v10 = vpack.c.bf16 %v228_v8, %v228_v8  ;;  %v234_v11 = vpack.c.bf16 %v230_v9, %v230_v9 }
 0x11d   :  { %530 = vmatprep.mubr.bf16.mxu0 %v232_v10  ;;  %570 = vmatprep.mubr.bf16.mxu1 %v234_v11 }
 0x11e   :  { %531 = vmatmul.mubr.bf16.vlgmr.msra.gmra.mrb[4].mxu0 %v231_v12  ;;  %571 = vmatmul.mubr.bf16.vlgmr.msra.gmra.mrb[4].mxu1 %v233_v13 }
 0x1f1   :  { %v654_v14 = vpop.f32.mrb[4].mxu0  ;;  %v676_v15 = vpop.f32.mrb[4].mxu1 }
 0x1f2   :  { %v655_v17 = vpop.f32.mrb[5].mxu0  ;;  %v677_v18 = vpop.f32.mrb[5].mxu1 }
 0x1f3   :  { %v656_v19 = vadd.f32 %v655_v17, %v654_v14  ;;  %v678_v20 = vadd.f32 %v677_v18, %v676_v15  ;;  %v657_v21 = vpop.f32.mrb[6].mxu0  ;;  %v679_v22 = vpop.f32.mrb[6].mxu1 }
 0x1f4   :  { %v658_v23 = vpop.f32.mrb[7].mxu0  ;;  %v680_v24 = vpop.f32.mrb[7].mxu1 }
 0x1f5   :  { %v533_v25 = vadd.f32 %v656_v19, %v605_v16 }
 0x1f7   :  { %v573_v26 = vadd.f32 %v678_v20, %v533_v25 }
 0x1f9   :  { %578 = vst [vmem:[#allocation8] sm:$0xff] %v573_v26 }
 0x1fa   :  { %812 = shalt.err (!%p809_p0)
}
 0x1fb   :  { %s813_s12 = scalar_lea.hbm %s927_s5, 128 }
 0x1fc   :  { %p814_p1 = scmp.ne.s32.totalorder %s927_s5, %s813_s12  ;;  %p817_p2 = scmp.lt.u32.totalorder %s813_s12, %s927_s5 }
 0x1fe   :  { %p819_p3 = pnand %p817_p2, %p814_p1 }
 0x200   :  { %822 = shalt.err (!%p819_p3)
}
 0x201   :  { %588 = dma.vmem_to_hbm [thread:$0]  %s586_s9, 128, %s927_s5, [#allocation4]  }
 0x202   :  { %827 = dma.done.wait [#allocation4], 128  }
 0x203   :  { %828 = vsyncadd [#allocation4], 4294967168 }
 0x204   :  { %592 = vsyncpa [#allocation3], 1 }
 0x205   :  { %593 = vsyncpa [#allocation6], 1 }
 0x206   :  { %594 = vsyncpa [#allocation4], 1 }

</bundles_post_ra>
